<compile_context>
chip_gen: v7x
topology: tpu7x:2x2x1
jax: 0.10.0
libtpu: 0.0.40
codegen_flags: <defaults>
</compile_context>

<pallas_src>
import functools

import jax
import jax.numpy as jnp
from jax.experimental import pallas as pl
from jax.experimental.pallas import tpu as pltpu

_LANE = 128
_NEG_PAD = -1e30        # padded-class logit: exp() underflows to 0, finite in f32
_NUM_SHARDS = 2         # leading 'parallel' grid axis (v7x has 2 TCs; harmless on v5e/v6e)


def _cdiv(a, b):
    return -(-a // b)


def _round_up(a, m):
    return _cdiv(a, m) * m


# ----------------------------------------------------------------------------
# Cross-entropy kernel (weight + label smoothing, mean reduction)
# ----------------------------------------------------------------------------
def _ce_kernel(logits_ref, labels_ref, weight_ref, num_ref, den_ref,
               acc_wnll, acc_lse, acc_wx, acc_wy,
               *, num_classes, eps, n_valid, tn, steps):
    s = pl.program_id(0)          # shard (parallel)
    i = pl.program_id(1)          # step within shard (reduction)

    @pl.when(i == 0)
    def _init():
        acc_wnll[...] = jnp.zeros_like(acc_wnll)
        acc_lse[...] = jnp.zeros_like(acc_lse)
        acc_wx[...] = jnp.zeros_like(acc_wx)
        acc_wy[...] = jnp.zeros_like(acc_wy)

    x = logits_ref[...].astype(jnp.float32)          # (tn, Cp)
    w = weight_ref[...].astype(jnp.float32)          # (1, Cp)
    lab = labels_ref[...]                            # (tn, 1) int32

    # per-row log-sum-exp (the lane reductions we need anyway)
    m = jnp.max(x, axis=-1, keepdims=True)                                  # (tn,1)
    lse = m + jnp.log(jnp.sum(jnp.exp(x - m), axis=-1, keepdims=True))      # (tn,1)

    cls = jax.lax.broadcasted_iota(jnp.int32, x.shape, 1)
    onehot = (cls == lab).astype(jnp.float32)        # (tn, Cp)
    wx = x * w                                       # single full-tile multiply

    w_y = jnp.sum(onehot * w, axis=-1, keepdims=True)       # w[y_i]            (tn,1)
    wx_y = jnp.sum(onehot * wx, axis=-1, keepdims=True)     # w[y_i]*x[i,y_i]   (tn,1)
    wx_row = jnp.sum(wx, axis=-1, keepdims=True)            # Σ_c w_c x_ic      (tn,1)

    # mask rows added by batch padding
    row = (s * steps + i) * tn + jax.lax.broadcasted_iota(jnp.int32, (tn, 1), 0)
    valid = (row < n_valid).astype(jnp.float32)              # (tn,1)

    acc_wnll[...] += valid * (w_y * lse - wx_y)   # w[y_i]*(lse_i - x[i,y_i])
    acc_lse[...] += valid * lse
    acc_wx[...] += valid * wx_row
    acc_wy[...] += valid * w_y

    @pl.when(i == pl.num_programs(1) - 1)
    def _final():
        sum_w = jnp.sum(w)                                        # scalar (one-time)
        wnll_s = jnp.sum(acc_wnll[...], axis=0, keepdims=True)    # (1,1)
        lse_s = jnp.sum(acc_lse[...], axis=0, keepdims=True)
        wx_s = jnp.sum(acc_wx[...], axis=0, keepdims=True)
        wy_s = jnp.sum(acc_wy[...], axis=0, keepdims=True)
        num = (1.0 - eps) * wnll_s + (eps / num_classes) * (sum_w * lse_s - wx_s)
        lane = jax.lax.broadcasted_iota(jnp.int32, (1, _LANE), 1)
        num_ref[...] = jnp.where(lane == 0, num, 0.0)
        den_ref[...] = jnp.where(lane == 0, wy_s, 0.0)


def cross_entropy_pallas(logits, labels, weight=None, label_smoothing=0.0):
    # TODO(synk): label_smoothing is baked as a compile-time constant (it is a
    # plain python float kwarg in the PyTorch module, so this matches usage).
    logits = jnp.asarray(logits).astype(jnp.float32)
    n, c = logits.shape
    if weight is None:
        weight = jnp.ones((c,), dtype=jnp.float32)       # None == all-ones (same math)
    weight = jnp.asarray(weight, dtype=jnp.float32).reshape(c)
    labels = jnp.asarray(labels, dtype=jnp.int32).reshape(n)

    cp = _round_up(c, _LANE)                             # lane-pad classes
    # row tile: as large as possible with double-buffered logits tile <= ~8 MiB
    # (safe against v7x's smaller scoped/physical VMEM)
    max_tn = max(8, (((8 << 20) // (2 * cp * 4)) // 8) * 8)
    tn = min(256, max_tn, _round_up(_cdiv(n, _NUM_SHARDS), 8))
    n_pad = _round_up(n, _NUM_SHARDS * tn)
    steps = n_pad // (_NUM_SHARDS * tn)

    if cp != c:   # padded classes: logit -> -1e30 (exp == 0), class weight -> 0
        logits = jnp.pad(logits, ((0, 0), (0, cp - c)), constant_values=_NEG_PAD)
        weight = jnp.pad(weight, (0, cp - c))
    if n_pad != n:   # padded rows are masked out inside the kernel
        logits = jnp.pad(logits, ((0, n_pad - n), (0, 0)))
        labels = jnp.pad(labels, (0, n_pad - n))
    labels2d = labels.reshape(n_pad, 1)
    weight2d = weight.reshape(1, cp)

    kernel = functools.partial(_ce_kernel, num_classes=c, eps=float(label_smoothing),
                               n_valid=n, tn=tn, steps=steps)
    out_struct = jax.ShapeDtypeStruct((1, _NUM_SHARDS * _LANE), jnp.float32)

    num_p, den_p = pl.pallas_call(
        kernel,
        out_shape=(out_struct, out_struct),
        grid_spec=pltpu.PrefetchScalarGridSpec(
            num_scalar_prefetch=0,
            grid=(_NUM_SHARDS, steps),
            in_specs=[pl.BlockSpec((tn, cp), lambda s, i: (s * steps + i, 0)),
                      pl.BlockSpec((tn, 1), lambda s, i: (s * steps + i, 0)),
                      pl.BlockSpec((1, cp), lambda s, i: (0, 0))],
            out_specs=[pl.BlockSpec((1, _LANE), lambda s, i: (0, s)),
                       pl.BlockSpec((1, _LANE), lambda s, i: (0, s))],
            scratch_shapes=[pltpu.VMEM((tn, 1), jnp.float32)] * 4),
        compiler_params=pltpu.CompilerParams(
            dimension_semantics=("parallel", "arbitrary")),
        cost_estimate=pl.CostEstimate(
            flops=8 * n_pad * cp,
            transcendentals=n_pad * (cp + 1),
            bytes_accessed=n_pad * cp * 4 + n_pad * 4 + cp * 4
            + 2 * _NUM_SHARDS * _LANE * 4),
    )(logits, labels2d, weight2d)

    # combine per-shard partials (partial lives in lane 0 of its shard block)
    return jnp.sum(num_p) / jnp.sum(den_p)


# ----------------------------------------------------------------------------
# MSE ** exponent kernel
# ----------------------------------------------------------------------------
def _mse_kernel(d_ref, t_ref, out_ref, acc_ref):
    i = pl.program_id(1)

    @pl.when(i == 0)
    def _init():
        acc_ref[...] = jnp.zeros_like(acc_ref)

    diff = d_ref[...].astype(jnp.float32) - t_ref[...].astype(jnp.float32)
    acc_ref[...] += diff * diff          # pure VPU; no per-step reduction

    @pl.when(i == pl.num_programs(1) - 1)
    def _final():
        ssq = jnp.sum(acc_ref[...])      # one-time collapse per shard
        lane = jax.lax.broadcasted_iota(jnp.int32, (1, _LANE), 1)
        out_ref[...] = jnp.where(lane == 0, ssq, 0.0)


def mse_pow_pallas(decoded, true_data, exponent):
    decoded = jnp.asarray(decoded)
    true_data = jnp.asarray(true_data)
    total = decoded.size

    rows = _cdiv(total, _LANE)
    # 1024 x 128 f32 tile = 512 KiB; 2 inputs x 2 pipeline buffers + accumulator
    # = ~2.5 MiB: comfortably under scoped VMEM on v5e/v6e/v7x.
    tile_rows = min(1024, _round_up(_cdiv(rows, _NUM_SHARDS), 8))
    rows_pad = _round_up(rows, _NUM_SHARDS * tile_rows)
    steps = rows_pad // (_NUM_SHARDS * tile_rows)
    total_pad = rows_pad * _LANE

    d = decoded.reshape(-1)
    t = true_data.reshape(-1)
    if total_pad != total:      # pad both with zeros -> diff == 0, contributes nothing
        d = jnp.pad(d, (0, total_pad - total))
        t = jnp.pad(t, (0, total_pad - total))
    d2 = d.reshape(rows_pad, _LANE)
    t2 = t.reshape(rows_pad, _LANE)

    itemsize = jnp.dtype(d2.dtype).itemsize
    out = pl.pallas_call(
        _mse_kernel,
        out_shape=jax.ShapeDtypeStruct((1, _NUM_SHARDS * _LANE), jnp.float32),
        grid_spec=pltpu.PrefetchScalarGridSpec(
            num_scalar_prefetch=0,
            grid=(_NUM_SHARDS, steps),
            in_specs=[pl.BlockSpec((tile_rows, _LANE), lambda s, i: (s * steps + i, 0)),
                      pl.BlockSpec((tile_rows, _LANE), lambda s, i: (s * steps + i, 0))],
            out_specs=pl.BlockSpec((1, _LANE), lambda s, i: (0, s)),
            scratch_shapes=[pltpu.VMEM((tile_rows, _LANE), jnp.float32)]),
        compiler_params=pltpu.CompilerParams(
            dimension_semantics=("parallel", "arbitrary")),
        cost_estimate=pl.CostEstimate(
            flops=3 * total_pad,
            transcendentals=0,
            bytes_accessed=2 * total_pad * itemsize + _NUM_SHARDS * _LANE * 4),
    )(d2, t2)

    mse = jnp.sum(out) / float(total)
    return mse ** exponent            # exponent is a python int (+1 / -1)


# ----------------------------------------------------------------------------
# Module wrapper (mirrors the PyTorch forward branching)
# ----------------------------------------------------------------------------
class SemiSupervisedLoss:
    def __init__(self, kind='normal'):
        self.kind = kind
        if kind == 'normal':
            self.exponent = 1
        elif kind == 'anomaly':
            self.exponent = -1
        else:
            raise ValueError('Kind: ' + kind + ' not supported.')

    def forward(self, true_data=None, labels=None, logits=None, decoded=None,
                boxes=None, weight=None, label_smoothing=0.0):
        if labels is not None and logits is not None and logits.size > 0:
            return cross_entropy_pallas(logits, labels, weight, label_smoothing)
        elif decoded is not None:
            return mse_pow_pallas(decoded, true_data, self.exponent)
        return jnp.array([0.0], dtype=jnp.float32)

    __call__ = forward


# ----------------------------------------------------------------------------
# Pure-JAX references for verification
# ----------------------------------------------------------------------------
def _ce_ref(logits, labels, weight, eps):
    logp = jax.nn.log_softmax(logits.astype(jnp.float32), axis=-1)
    c = logits.shape[-1]
    nll = -jnp.take_along_axis(logp, labels[:, None], axis=1)[:, 0]
    wy = weight[labels]
    denom = jnp.sum(wy)
    nll_term = jnp.sum(wy * nll) / denom
    smooth_term = jnp.sum(-(logp * weight[None, :])) / denom
    return (1.0 - eps) * nll_term + (eps / c) * smooth_term


def _mse_ref(decoded, true_data, exponent):
    mse = jnp.mean((decoded.astype(jnp.float32) - true_data.astype(jnp.float32)) ** 2)
    return mse ** exponent


if __name__ == "__main__":
    key = jax.random.PRNGKey(0)
    k1, k2, k3, k4, k5, k6, k7, k8 = jax.random.split(key, 8)

    # ---- classification branch: logits [16, 32], labels [16], weight [32] ----
    N, C = 16, 32
    logits = jax.random.normal(k1, (N, C), dtype=jnp.float32)
    labels = jax.random.randint(k2, (N,), 0, C, dtype=jnp.int32)
    weight = jax.random.uniform(k3, (C,), dtype=jnp.float32, minval=0.5, maxval=1.5)
    eps = 0.1

    loss_mod = SemiSupervisedLoss(kind='normal')
    ce = loss_mod(labels=labels, logits=logits, weight=weight, label_smoothing=eps)
    jax.block_until_ready(ce)
    ce_ref = _ce_ref(logits, labels, weight, eps)
    assert jnp.allclose(ce, ce_ref, rtol=1e-5, atol=1e-5), (ce, ce_ref)

    # ---- classification branch, weight=None, odd batch (exercises row padding) ----
    N2 = 10
    logits2 = jax.random.normal(k6, (N2, C), dtype=jnp.float32)
    labels2 = jax.random.randint(k7, (N2,), 0, C, dtype=jnp.int32)
    ce2 = SemiSupervisedLoss('normal')(labels=labels2, logits=logits2, label_smoothing=0.2)
    jax.block_until_ready(ce2)
    ce2_ref = _ce_ref(logits2, labels2, jnp.ones((C,), jnp.float32), 0.2)
    assert jnp.allclose(ce2, ce2_ref, rtol=1e-5, atol=1e-5), (ce2, ce2_ref)

    # ---- reconstruction branch: decoded/true_data [2, 4, 16, 16] (NCHW) ----
    x_true = jax.random.normal(k4, (2, 4, 16, 16), dtype=jnp.float32)
    x_dec = x_true + 0.1 * jax.random.normal(k5, (2, 4, 16, 16), dtype=jnp.float32)

    mse_n = SemiSupervisedLoss(kind='normal')(true_data=x_true, decoded=x_dec)
    mse_a = SemiSupervisedLoss(kind='anomaly')(true_data=x_true, decoded=x_dec)
    jax.block_until_ready(mse_n)
    jax.block_until_ready(mse_a)
    assert jnp.allclose(mse_n, _mse_ref(x_dec, x_true, 1), rtol=1e-5, atol=1e-6)
    assert jnp.allclose(mse_a, _mse_ref(x_dec, x_true, -1), rtol=1e-5, atol=1e-3)

    # ---- reconstruction branch with a non-128-divisible size (exercises padding) ----
    y_true = jax.random.normal(k8, (3, 5, 7), dtype=jnp.float32)
    y_dec = y_true + 0.05
    mse_odd = SemiSupervisedLoss(kind='normal')(true_data=y_true, decoded=y_dec)
    jax.block_until_ready(mse_odd)
    assert jnp.allclose(mse_odd, _mse_ref(y_dec, y_true, 1), rtol=1e-5, atol=1e-6)

    # ---- default branch ----
    zero = SemiSupervisedLoss()(boxes=None)
    jax.block_until_ready(zero)
    assert zero.shape == (1,) and float(zero[0]) == 0.0

    print("KERNEL_OK")
</pallas_src>

<mosaic_0001>
module attributes {stable_mosaic.version = 11 : i64} {
  func.func @_ce_kernel(%arg0: i32, %arg1: i32, %arg2: memref<8x128xf32, #tpu.memory_space<vmem>>, %arg3: memref<8x1xi32, #tpu.memory_space<vmem>>, %arg4: memref<1x128xf32, #tpu.memory_space<vmem>>, %arg5: memref<1x128xf32, #tpu.memory_space<vmem>>, %arg6: memref<1x128xf32, #tpu.memory_space<vmem>>, %arg7: memref<8x1xf32, #tpu.memory_space<vmem>>, %arg8: memref<8x1xf32, #tpu.memory_space<vmem>>, %arg9: memref<8x1xf32, #tpu.memory_space<vmem>>, %arg10: memref<8x1xf32, #tpu.memory_space<vmem>>) attributes {dimension_semantics = [#tpu.dimension_semantics<parallel>, #tpu.dimension_semantics<arbitrary>], iteration_bounds = array<i64: 2, 1>, scalar_prefetch = 0 : i64, scratch_operands = 4 : i64, tpu.core_type = #tpu.core_type<tc>, window_params = [{transform_indices = @transform_0, window_bounds = array<i64: 8, 128>}, {transform_indices = @transform_1, window_bounds = array<i64: 8, 1>}, {pipeline_mode = #tpu.pipeline_mode<synchronous>, transform_indices = @transform_2, window_bounds = array<i64: 1, 128>}, {transform_indices = @transform_3, window_bounds = array<i64: 1, 128>}, {transform_indices = @transform_4, window_bounds = array<i64: 1, 128>}]} {
    %c0_i32 = arith.constant 0 : i32
    %0 = arith.cmpi eq, %arg1, %c0_i32 : i32
    %1 = arith.extui %0 : i1 to i32
    %c0_i32_0 = arith.constant 0 : i32
    %2 = arith.cmpi ne, %1, %c0_i32_0 : i32
    scf.if %2 {
      %cst_28 = arith.constant 0.000000e+00 : f32
      %62 = vector.broadcast %cst_28 : f32 to vector<8x1xf32>
      %c0_29 = arith.constant 0 : index
      %c0_30 = arith.constant 0 : index
      %63 = vector.load %arg7[%c0_29, %c0_30] : memref<8x1xf32, #tpu.memory_space<vmem>>, vector<8x1xf32>
      tpu.vector_store %arg7[%c0_29, %c0_30], %62 {strides = array<i32>} : memref<8x1xf32, #tpu.memory_space<vmem>>, vector<8x1xf32>,
      %cst_31 = arith.constant 0.000000e+00 : f32
      %64 = vector.broadcast %cst_31 : f32 to vector<8x1xf32>
      %c0_32 = arith.constant 0 : index
      %c0_33 = arith.constant 0 : index
      %65 = vector.load %arg8[%c0_32, %c0_33] : memref<8x1xf32, #tpu.memory_space<vmem>>, vector<8x1xf32>
      tpu.vector_store %arg8[%c0_32, %c0_33], %64 {strides = array<i32>} : memref<8x1xf32, #tpu.memory_space<vmem>>, vector<8x1xf32>,
      %cst_34 = arith.constant 0.000000e+00 : f32
      %66 = vector.broadcast %cst_34 : f32 to vector<8x1xf32>
      %c0_35 = arith.constant 0 : index
      %c0_36 = arith.constant 0 : index
      %67 = vector.load %arg9[%c0_35, %c0_36] : memref<8x1xf32, #tpu.memory_space<vmem>>, vector<8x1xf32>
      tpu.vector_store %arg9[%c0_35, %c0_36], %66 {strides = array<i32>} : memref<8x1xf32, #tpu.memory_space<vmem>>, vector<8x1xf32>,
      %cst_37 = arith.constant 0.000000e+00 : f32
      %68 = vector.broadcast %cst_37 : f32 to vector<8x1xf32>
      %c0_38 = arith.constant 0 : index
      %c0_39 = arith.constant 0 : index
      %69 = vector.load %arg10[%c0_38, %c0_39] : memref<8x1xf32, #tpu.memory_space<vmem>>, vector<8x1xf32>
      tpu.vector_store %arg10[%c0_38, %c0_39], %68 {strides = array<i32>} : memref<8x1xf32, #tpu.memory_space<vmem>>, vector<8x1xf32>,
    } else {
    }
    %c0 = arith.constant 0 : index
    %c0_1 = arith.constant 0 : index
    %3 = vector.load %arg2[%c0, %c0_1] : memref<8x128xf32, #tpu.memory_space<vmem>>, vector<8x128xf32>
    %c0_2 = arith.constant 0 : index
    %c0_3 = arith.constant 0 : index
    %4 = vector.load %arg4[%c0_2, %c0_3] : memref<1x128xf32, #tpu.memory_space<vmem>>, vector<1x128xf32>
    %c0_4 = arith.constant 0 : index
    %c0_5 = arith.constant 0 : index
    %5 = vector.load %arg3[%c0_4, %c0_5] : memref<8x1xi32, #tpu.memory_space<vmem>>, vector<8x1xi32>
    %cst = arith.constant dense<0xFF800000> : vector<8xf32>
    %6 = vector.multi_reduction <maximumf>, %3, %cst [1] : vector<8x128xf32> to vector<8xf32>
    %7 = vector.shape_cast %6 : vector<8xf32> to vector<8x1xf32>
    %8 = vector.broadcast %7 : vector<8x1xf32> to vector<8x128xf32>
    %9 = arith.subf %3, %8 : vector<8x128xf32>
    %10 = math.exp %9 : vector<8x128xf32>
    %cst_6 = arith.constant dense<0.000000e+00> : vector<8xf32>
    %11 = vector.multi_reduction <add>, %10, %cst_6 [1] : vector<8x128xf32> to vector<8xf32>
    %12 = vector.shape_cast %11 : vector<8xf32> to vector<8x1xf32>
    %13 = math.log %12 : vector<8x1xf32>
    %14 = arith.addf %7, %13 : vector<8x1xf32>
    %15 = tpu.iota {dimensions = array<i32: 1>} : vector<8x128xi32>
    %16 = vector.broadcast %5 : vector<8x1xi32> to vector<8x128xi32>
    %17 = arith.cmpi eq, %15, %16 : vector<8x128xi32>
    %18 = arith.extui %17 : vector<8x128xi1> to vector<8x128xi32>
    %19 = arith.sitofp %18 : vector<8x128xi32> to vector<8x128xf32>
    %20 = vector.broadcast %4 : vector<1x128xf32> to vector<8x128xf32>
    %21 = arith.mulf %3, %20 : vector<8x128xf32>
    %22 = vector.broadcast %4 : vector<1x128xf32> to vector<8x128xf32>
    %23 = arith.mulf %19, %22 : vector<8x128xf32>
    %cst_7 = arith.constant dense<0.000000e+00> : vector<8xf32>
    %24 = vector.multi_reduction <add>, %23, %cst_7 [1] : vector<8x128xf32> to vector<8xf32>
    %25 = vector.shape_cast %24 : vector<8xf32> to vector<8x1xf32>
    %26 = arith.mulf %19, %21 : vector<8x128xf32>
    %cst_8 = arith.constant dense<0.000000e+00> : vector<8xf32>
    %27 = vector.multi_reduction <add>, %26, %cst_8 [1] : vector<8x128xf32> to vector<8xf32>
    %28 = vector.shape_cast %27 : vector<8xf32> to vector<8x1xf32>
    %cst_9 = arith.constant dense<0.000000e+00> : vector<8xf32>
    %29 = vector.multi_reduction <add>, %21, %cst_9 [1] : vector<8x128xf32> to vector<8xf32>
    %30 = vector.shape_cast %29 : vector<8xf32> to vector<8x1xf32>
    %c1_i32 = arith.constant 1 : i32
    %31 = arith.muli %arg0, %c1_i32 : i32
    %32 = arith.addi %31, %arg1 : i32
    %c8_i32 = arith.constant 8 : i32
    %33 = arith.muli %32, %c8_i32 : i32
    %34 = tpu.iota {dimensions = array<i32: 0>} : vector<8x1xi32>
    %35 = vector.broadcast %33 : i32 to vector<8x1xi32>
    %36 = arith.addi %35, %34 : vector<8x1xi32>
    %c16_i32 = arith.constant 16 : i32
    %37 = vector.broadcast %c16_i32 : i32 to vector<8x1xi32>
    %38 = arith.cmpi slt, %36, %37 : vector<8x1xi32>
    %39 = arith.extui %38 : vector<8x1xi1> to vector<8x1xi32>
    %40 = arith.sitofp %39 : vector<8x1xi32> to vector<8x1xf32>
    %c0_10 = arith.constant 0 : index
    %c0_11 = arith.constant 0 : index
    %41 = vector.load %arg7[%c0_10, %c0_11] : memref<8x1xf32, #tpu.memory_space<vmem>>, vector<8x1xf32>
    %42 = arith.mulf %25, %14 : vector<8x1xf32>
    %43 = arith.subf %42, %28 : vector<8x1xf32>
    %44 = arith.mulf %40, %43 : vector<8x1xf32>
    %45 = arith.addf %41, %44 : vector<8x1xf32>
    %c0_12 = arith.constant 0 : index
    %c0_13 = arith.constant 0 : index
    %46 = vector.load %arg7[%c0_12, %c0_13] : memref<8x1xf32, #tpu.memory_space<vmem>>, vector<8x1xf32>
    tpu.vector_store %arg7[%c0_12, %c0_13], %45 {strides = array<i32>} : memref<8x1xf32, #tpu.memory_space<vmem>>, vector<8x1xf32>,
    %c0_14 = arith.constant 0 : index
    %c0_15 = arith.constant 0 : index
    %47 = vector.load %arg8[%c0_14, %c0_15] : memref<8x1xf32, #tpu.memory_space<vmem>>, vector<8x1xf32>
    %48 = arith.mulf %40, %14 : vector<8x1xf32>
    %49 = arith.addf %47, %48 : vector<8x1xf32>
    %c0_16 = arith.constant 0 : index
    %c0_17 = arith.constant 0 : index
    %50 = vector.load %arg8[%c0_16, %c0_17] : memref<8x1xf32, #tpu.memory_space<vmem>>, vector<8x1xf32>
    tpu.vector_store %arg8[%c0_16, %c0_17], %49 {strides = array<i32>} : memref<8x1xf32, #tpu.memory_space<vmem>>, vector<8x1xf32>,
    %c0_18 = arith.constant 0 : index
    %c0_19 = arith.constant 0 : index
    %51 = vector.load %arg9[%c0_18, %c0_19] : memref<8x1xf32, #tpu.memory_space<vmem>>, vector<8x1xf32>
    %52 = arith.mulf %40, %30 : vector<8x1xf32>
    %53 = arith.addf %51, %52 : vector<8x1xf32>
    %c0_20 = arith.constant 0 : index
    %c0_21 = arith.constant 0 : index
    %54 = vector.load %arg9[%c0_20, %c0_21] : memref<8x1xf32, #tpu.memory_space<vmem>>, vector<8x1xf32>
    tpu.vector_store %arg9[%c0_20, %c0_21], %53 {strides = array<i32>} : memref<8x1xf32, #tpu.memory_space<vmem>>, vector<8x1xf32>,
    %c0_22 = arith.constant 0 : index
    %c0_23 = arith.constant 0 : index
    %55 = vector.load %arg10[%c0_22, %c0_23] : memref<8x1xf32, #tpu.memory_space<vmem>>, vector<8x1xf32>
    %56 = arith.mulf %40, %25 : vector<8x1xf32>
    %57 = arith.addf %55, %56 : vector<8x1xf32>
    %c0_24 = arith.constant 0 : index
    %c0_25 = arith.constant 0 : index
    %58 = vector.load %arg10[%c0_24, %c0_25] : memref<8x1xf32, #tpu.memory_space<vmem>>, vector<8x1xf32>
    tpu.vector_store %arg10[%c0_24, %c0_25], %57 {strides = array<i32>} : memref<8x1xf32, #tpu.memory_space<vmem>>, vector<8x1xf32>,
    %c0_i32_26 = arith.constant 0 : i32
    %59 = arith.cmpi eq, %arg1, %c0_i32_26 : i32
    %60 = arith.extui %59 : i1 to i32
    %c0_i32_27 = arith.constant 0 : i32
    %61 = arith.cmpi ne, %60, %c0_i32_27 : i32
    scf.if %61 {
      %62 = vector.shape_cast %4 : vector<1x128xf32> to vector<1x1x128xf32>
      %cst_28 = arith.constant dense<0.000000e+00> : vector<1xf32>
      %63 = vector.multi_reduction <add>, %62, %cst_28 [1, 2] : vector<1x1x128xf32> to vector<1xf32>
      %64 = vector.shape_cast %63 : vector<1xf32> to vector<1x1x1xf32>
      %65 = vector.extract %64[0, 0, 0] : f32 from vector<1x1x1xf32>
      %c0_29 = arith.constant 0 : index
      %c0_30 = arith.constant 0 : index
      %66 = vector.load %arg7[%c0_29, %c0_30] : memref<8x1xf32, #tpu.memory_space<vmem>>, vector<8x1xf32>
      %cst_31 = arith.constant dense<0.000000e+00> : vector<1xf32>
      %67 = vector.multi_reduction <add>, %66, %cst_31 [0] : vector<8x1xf32> to vector<1xf32>
      %68 = vector.shape_cast %67 : vector<1xf32> to vector<1x1xf32>
      %c0_32 = arith.constant 0 : index
      %c0_33 = arith.constant 0 : index
      %69 = vector.load %arg8[%c0_32, %c0_33] : memref<8x1xf32, #tpu.memory_space<vmem>>, vector<8x1xf32>
      %cst_34 = arith.constant dense<0.000000e+00> : vector<1xf32>
      %70 = vector.multi_reduction <add>, %69, %cst_34 [0] : vector<8x1xf32> to vector<1xf32>
      %71 = vector.shape_cast %70 : vector<1xf32> to vector<1x1xf32>
      %c0_35 = arith.constant 0 : index
      %c0_36 = arith.constant 0 : index
      %72 = vector.load %arg9[%c0_35, %c0_36] : memref<8x1xf32, #tpu.memory_space<vmem>>, vector<8x1xf32>
      %cst_37 = arith.constant dense<0.000000e+00> : vector<1xf32>
      %73 = vector.multi_reduction <add>, %72, %cst_37 [0] : vector<8x1xf32> to vector<1xf32>
      %74 = vector.shape_cast %73 : vector<1xf32> to vector<1x1xf32>
      %c0_38 = arith.constant 0 : index
      %c0_39 = arith.constant 0 : index
      %75 = vector.load %arg10[%c0_38, %c0_39] : memref<8x1xf32, #tpu.memory_space<vmem>>, vector<8x1xf32>
      %cst_40 = arith.constant dense<0.000000e+00> : vector<1xf32>
      %76 = vector.multi_reduction <add>, %75, %cst_40 [0] : vector<8x1xf32> to vector<1xf32>
      %77 = vector.shape_cast %76 : vector<1xf32> to vector<1x1xf32>
      %cst_41 = arith.constant 0.899999976 : f32
      %78 = vector.broadcast %cst_41 : f32 to vector<1x1xf32>
      %79 = arith.mulf %78, %68 : vector<1x1xf32>
      %80 = vector.broadcast %65 : f32 to vector<1x1xf32>
      %81 = arith.mulf %80, %71 : vector<1x1xf32>
      %82 = arith.subf %81, %74 : vector<1x1xf32>
      %cst_42 = arith.constant 3.125000e-03 : f32
      %83 = vector.broadcast %cst_42 : f32 to vector<1x1xf32>
      %84 = arith.mulf %83, %82 : vector<1x1xf32>
      %85 = arith.addf %79, %84 : vector<1x1xf32>
      %86 = tpu.iota {dimensions = array<i32: 1>} : vector<1x128xi32>
      %c0_i32_43 = arith.constant 0 : i32
      %87 = vector.broadcast %c0_i32_43 : i32 to vector<1x128xi32>
      %88 = arith.cmpi eq, %86, %87 : vector<1x128xi32>
      %cst_44 = arith.constant 0.000000e+00 : f32
      %89 = vector.shape_cast %85 : vector<1x1xf32> to vector<1x1xf32>
      %90 = vector.broadcast %89 : vector<1x1xf32> to vector<1x128xf32>
      %91 = vector.broadcast %cst_44 : f32 to vector<1x128xf32>
      %92 = arith.select %88, %90, %91 : vector<1x128xi1>, vector<1x128xf32>
      %c0_45 = arith.constant 0 : index
      %c0_46 = arith.constant 0 : index
      %93 = vector.load %arg5[%c0_45, %c0_46] : memref<1x128xf32, #tpu.memory_space<vmem>>, vector<1x128xf32>
      tpu.vector_store %arg5[%c0_45, %c0_46], %92 {strides = array<i32>} : memref<1x128xf32, #tpu.memory_space<vmem>>, vector<1x128xf32>,
      %c0_i32_47 = arith.constant 0 : i32
      %94 = vector.broadcast %c0_i32_47 : i32 to vector<1x128xi32>
      %95 = arith.cmpi eq, %86, %94 : vector<1x128xi32>
      %cst_48 = arith.constant 0.000000e+00 : f32
      %96 = vector.shape_cast %77 : vector<1x1xf32> to vector<1x1xf32>
      %97 = vector.broadcast %96 : vector<1x1xf32> to vector<1x128xf32>
      %98 = vector.broadcast %cst_48 : f32 to vector<1x128xf32>
      %99 = arith.select %95, %97, %98 : vector<1x128xi1>, vector<1x128xf32>
      %c0_49 = arith.constant 0 : index
      %c0_50 = arith.constant 0 : index
      %100 = vector.load %arg6[%c0_49, %c0_50] : memref<1x128xf32, #tpu.memory_space<vmem>>, vector<1x128xf32>
      tpu.vector_store %arg6[%c0_49, %c0_50], %99 {strides = array<i32>} : memref<1x128xf32, #tpu.memory_space<vmem>>, vector<1x128xf32>,
    } else {
    }
    return
  }
  func.func @transform_0(%arg0: i32, %arg1: i32) -> (i32, i32) {
    %c1_i32 = arith.constant 1 : i32
    %0 = arith.muli %arg0, %c1_i32 : i32
    %1 = arith.addi %0, %arg1 : i32
    %c0_i32 = arith.constant 0 : i32
    %c0_i32_0 = arith.constant 0 : i32
    return %1, %c0_i32 : i32, i32
  }
  func.func @transform_1(%arg0: i32, %arg1: i32) -> (i32, i32) {
    %c1_i32 = arith.constant 1 : i32
    %0 = arith.muli %arg0, %c1_i32 : i32
    %1 = arith.addi %0, %arg1 : i32
    %c0_i32 = arith.constant 0 : i32
    %c0_i32_0 = arith.constant 0 : i32
    return %1, %c0_i32 : i32, i32
  }
  func.func @transform_2(%arg0: i32, %arg1: i32) -> (i32, i32) {
    %c0_i32 = arith.constant 0 : i32
    %c0_i32_0 = arith.constant 0 : i32
    %c0_i32_1 = arith.constant 0 : i32
    return %c0_i32, %c0_i32_0 : i32, i32
  }
  func.func @transform_3(%arg0: i32, %arg1: i32) -> (i32, i32) {
    %c0_i32 = arith.constant 0 : i32
    %c0_i32_0 = arith.constant 0 : i32
    return %c0_i32, %arg0 : i32, i32
  }
  func.func @transform_4(%arg0: i32, %arg1: i32) -> (i32, i32) {
    %c0_i32 = arith.constant 0 : i32
    %c0_i32_0 = arith.constant 0 : i32
    return %c0_i32, %arg0 : i32, i32
  }
}

</mosaic_0001>

<bundles_post_ra>
// kernel: tpu_custom_call.1
= control target key start
LH: loop header
LB: loop body
LE: loop exit
PB: predicated region body
PF: predicated region fallthrough
CT: control target
= control target key end

     0   :  { %10 = vsyncpa [#allocation7], 0  ;;  %s927_s0 = inlined_call_operand.vmem [shape: f32[16,128], index: 0, kind: input, shape index: {}]   ;;  %s928_s1 = inlined_call_operand.vmem [shape: s32[16,1], index: 1, kind: input, shape index: {}]   ;;  %s929_s2 = inlined_call_operand.vmem [shape: f32[1,128], index: 2, kind: input, shape index: {}]   ;;  %s930_s3 = inlined_call_operand.hbm [shape: f32[1,256], index: 3, kind: output, shape index: {0}]   ;;  %s931_s4 = inlined_call_operand.hbm [shape: f32[1,256], index: 4, kind: output, shape index: {1}]  }
   0x1   :  { %12 = vsyncpa [#allocation7 + $0x1], 0 }
   0x2   :  { %13 = vsyncpa [#allocation9], 0 }
   0x3   :  { %15 = vsyncpa [#allocation9 + $0x1], 0  ;;  %s743_s15 = smov 0   ;;  %s745_s16 = smov 0  }
   0x4   :  { %s747_s17 = smov 0   ;;  %s749_s18 = smov 0  }
   0x5   :  { %s751_s19 = smov 0   ;;  %s753_s20 = smov 0  }
   0x6 LB: > { %s518_s21 = sadd.s32 4294967295, %s712_s20   ;;  %s519_s22 = sadd.s32 4294967294, %s712_s20   ;;  %s712_s20 = sphi %s753_s20, %s21_s20   ;;  %s708_s19 = sphi %s751_s19, %s938_s19   ;;  %s704_s18 = sphi %s749_s18, %s937_s18   ;;  %s700_s17 = sphi %s747_s17, %s936_s17   ;;  %s696_s16 = sphi %s745_s16, %s935_s16   ;;  %s692_s15 = sphi %s743_s15, %s934_s15  }
   0x7   : > { %s33_s23 = sadd.s32 1, %s708_s19  ;;  %s117_s24 = sadd.s32 1, %s700_s17 }
   0x8   : > { %p35_p0 = scmp.ge.s32.totalorder %s33_s23, 2  ;;  %p127_p1 = scmp.ne.s32.totalorder %s700_s17, %s696_s16 }
   0x9   : > { %p128_p2 = scmp.eq.s32.totalorder %s518_s21, 1  ;;  %p133_p3 = scmp.ne.s32.totalorder %s696_s16, %s692_s15 }
   0xa   : > { %s940_s23 = smov (%p35_p0, %s33_s23), 0  ;;  %p134_p5 = scmp.eq.s32.totalorder %s519_s22, 1 }
   0xb   : > { %p783_p4 = por %p128_p2, %p127_p1  ;;  %s114_s26 = ssub.s32 %s708_s19, %s940_s23 }
   0xc   : > { %p522_p6 = scmp.ge.s32.totalorder %s712_s20, 1  ;;  %p115_p7 = scmp.eq.s32.totalorder %s114_s26, 0 }
   0xd   : > { %p790_p8 = por %p134_p5, %p133_p3  ;;  %p199_p9 = scmp.lt.s32.totalorder %s712_s20, 3 }
   0xe   : > { %s796_s28 = scalar_select %p115_p7, %s700_s17, %s117_s24  }
   0xf   : > { %p200_p10 = pnand %p522_p6, %p199_p9 }
  0x10   : > { %p234_p11 = scmp.lt.s32.totalorder (!%p200_p10), %s704_s18, 1  ;;  %v255_v0 = vld [vmem:[%s929_s2] sm:$0x1] (!%p200_p10)  ;;  %vm321_vm0 = vcmask (!%p200_p10), 1040384   ;;  %v714_v1 = vmov (!%p200_p10), 0   ;;  %v267_v8 = vlaneseq (!%p200_p10)  ;;  %v715_v21 = vmov (!%p200_p10), 0.0  }
  0x11   : > { %203 = sbr.rel (%p200_p10) target bundleno = 542 (0x21e), region = 32  ;;  %596 = vset.pattern.permute.xlu0 (!%p200_p10), %v714_v1  ;;  %v322_v2 = vsel (!%p200_p10), %vm321_vm0, %v255_v0, 0.0  ;;  %597 = vset.pattern.permute.xlu1 (!%p200_p10), %v714_v1  ;;  %vm249_vm2 = vcmask (!%p200_p10), 7168   ;;  %s526_s13 = sshll.u32 (!%p200_p10), %s704_s18, 3 }
  0x12   : > { %323 = vadd.xlane.f32.xlu1 (!%p200_p10), %v322_v2  ;;  %v277_v14 = vshrl.u32 (!%p200_p10), %v267_v8, 7  ;;  %v809_v16 = vand.u32 (!%p200_p10), 127, %v267_v8  ;;  %251 = vst.msk [vmem:[#allocation3] sm:$0xff] (!%p200_p10), %vm249_vm2, %v715_v21  ;;  %253 = vst.msk [vmem:[#allocation5] sm:$0xff] (!%p200_p10), %vm249_vm2, %v715_v21  ;;  %v294_v27 = vstv (!%p200_p10), %s526_s13  ;;  %s826_s21 = sand.u32 (!%p200_p10), 1, %s696_s16   ;;  %s528_s26 = sshll.u32 (!%p200_p10), %s704_s18, 4 }
  0x13   : > { %250 = vst.msk [vmem:[#allocation2] sm:$0xff] (!%p200_p10), %vm249_vm2, %v715_v21  ;;  %252 = vst.msk [vmem:[#allocation4] sm:$0xff] (!%p200_p10), %vm249_vm2, %v715_v21  ;;  %s226_s22 = scalar_lea.vmem (!%p200_p10), [#allocation6], %s826_s21  ;;  %s386_s8 = scalar_lea.sflag (!%p200_p10), [#allocation7], %s826_s21 }
  0x14   : > { %v278_v18 = vsub.s32 (!%p200_p10), 0, %v277_v14  ;;  %v295_v28 = vadd.s32 (!%p200_p10), %v294_v27, %v277_v14  ;;  %s402_s24 = sshll.u32 (!%p200_p10), %s226_s22, 4  ;;  %vm370_vm4 = vcmp.eq.s32.totalorder (!%p200_p10), %v809_v16, 0  ;;  %s716_s10 = smov (!%p200_p10), [#allocation6]   ;;  %s838_s24 = int_to_ptr.vmem [resolvable:$true] %s402_s24 }
  0x15   : > { %s606_s11 = sshll.u32 (!%p200_p10), %s716_s10, 4  ;;  %s607_s11 = int_to_ptr.vmem [resolvable:$false] %s606_s11 }
  0x16   : > { %v279_v20 = vrot.slane (!%p200_p10), %v255_v0, %v278_v18  ;;  %vm296_vm3 = vcmp.lt.s32.totalorder (!%p200_p10), %v295_v28, 16  ;;  %p609_p1 = scmp.lt.s32.totalorder (!%p200_p10), %s838_s24, %s607_s11 }
  0x17   : > { %v527_v30 = vsel (!%p200_p10), %vm296_vm3, 1.0, %v715_v21 }
  0x18   : > { %s235_s5 = scalar_select %p234_p11, %s704_s18, 1 }
  0x19   : > { %v314_v31 = vld [vmem:[#allocation5] sm:$0xff]  ;;  %v306_v42 = vld [vmem:[#allocation3] sm:$0xff] }
  0x1a   : > { %s523_s6 = sshll.u32 %s235_s5, 3  ;;  %v310_v38 = vld [vmem:[#allocation4] sm:$0xff]  ;;  %v299_v48 = vld [vmem:[#allocation2] sm:$0xff]  ;;  %s836_s5 = scalar_lea.hbm %s930_s3, %s528_s26 }
  0x1b   : > { %s237_s9 = scalar_lea.vmem %s927_s0, %s523_s6  ;;  %s243_s12 = scalar_lea.vmem %s928_s1, %s523_s6 }
  0x1c   : > { %v254_v3 = vld [vmem:[%s237_s9] sm:$0xff]  ;;  %s232_s6 = scalar_lea.vmem [#allocation8], %s826_s21  ;;  %s602_s9 = scalar_lea.vmem %s838_s24, 16 }
  0x1d   : > { %257 = vmax.xlane.f32.xlu0 %v254_v3  ;;  %v256_v4 = vld [vmem:[%s243_s12] sm:$0xff]  ;;  %v281_v25 = vmul.f32 %v279_v20, %v254_v3  ;;  %s845_s7 = sshll.u32 %s232_s6, 4  ;;  %p603_p12 = scmp.ne.s32.totalorder %s838_s24, %s602_s9  ;;  %s877_s7 = int_to_ptr.vmem [resolvable:$true] %s845_s7 }
  0x1e   : > { %s608_s12 = scalar_lea.vmem %s607_s11, 32 }
  0x1f   : > { %p604_p13 = pnand %p603_p12, %p783_p4  ;;  %p610_p2 = scmp.lt.s32.totalorder %s608_s12, %s602_s9 }
  0x21   : > { %p605_p0 = pneg %p604_p13  ;;  %p611_p3 = por %p610_p2, %p609_p1 }
  0x23   : > { %p612_p5 = pnand %p611_p3, %p605_p0 }
  0x33   : > { %270 = vperm.xlu0 %596, %v256_v4  }
  0x9f   : > { %v324_v5 = vpop.xlane.xlu1 %323 }
  0xa0   : > { %v325_v6 = vrot.slane %v324_v5, 4 }
  0xa2   : > { %v326_v7 = vadd.f32 %v325_v6, %v324_v5 }
  0xa4   : > { %v327_v10 = vrot.slane %v326_v7, 2 }
  0xa6   : > { %v328_v12 = vadd.f32 %v327_v10, %v326_v7 }
  0xa8   : > { %v329_v15 = vrot.slane %v328_v12, 1 }
  0xaa   : > { %v258_v9 = vpop.xlane.xlu0 %257  ;;  %v330_v17 = vadd.f32 %v329_v15, %v328_v12 }
  0xab   : > { %v259_v11 = vsub.f32 %v254_v3, %v258_v9 }
  0xac   : > { %532 = vpush %v330_v17 }
  0xad   : > { %v260_v13 = vmul.f32 1.442695, %v259_v11 }
  0xaf   : > { %598 = vpow2.f32 %v260_v13 }
  0xb2   : > { %v271_v19 = vpop.permute.xlu0 %270 }
  0xb3   : > { %vm272_vm1 = vcmp.eq.s32.totalorder %v809_v16, %v271_v19 }
  0xb4   : > { %v525_v22 = vsel %vm272_vm1, 1.0, %v715_v21 }
  0xb5   : > { %v282_v24 = vmul.f32 %v525_v22, %v279_v20  ;;  %v285_v26 = vmul.f32 %v525_v22, %v281_v25 }
  0xb9   : > { %v599_v23 = vpop.eup %598 }
  0xba   : > { %262 = vadd.xlane.f32.xlu1 %v599_v23 }
  0xbe   : > { %283 = vadd.xlane.f32.xlu1 %v282_v24 }
  0xc2   : > { %286 = vadd.xlane.f32.xlu1 %v285_v26 }
  0xc6   : > { %288 = vadd.xlane.f32.xlu1 %v281_v25 }
  0xdd   : > { %s533_s14 = spop %532 }
  0xde   : > { %v365_v13 = vstv %s533_s14 }
 0x147   : > { %v263_v29 = vpop.xlane.xlu1 %262 }
 0x148   : > { %600 = vlog2.f32 %v263_v29 }
 0x14b   : > { %v284_v32 = vpop.xlane.xlu1 %283 }
 0x14c   : > { %v315_v33 = vmul.f32 %v527_v30, %v284_v32 }
 0x14e   : > { %v316_v34 = vadd.f32 %v315_v33, %v314_v31 }
 0x14f   : > { %v287_v35 = vpop.xlane.xlu1 %286 }
 0x150   : > { %317 = vst.msk [vmem:[#allocation5] sm:$0xff] %vm249_vm2, %v316_v34 }
 0x152   : > { %v601_v36 = vpop.eup %600 }
 0x153   : > { %v265_v37 = vmul.f32 0.6931472, %v601_v36  ;;  %v289_v39 = vpop.xlane.xlu1 %288 }
 0x154   : > { %v311_v40 = vmul.f32 %v527_v30, %v289_v39 }
 0x155   : > { %v266_v41 = vadd.f32 %v265_v37, %v258_v9 }
 0x156   : > { %v312_v43 = vadd.f32 %v311_v40, %v310_v38 }
 0x157   : > { %v307_v44 = vmul.f32 %v527_v30, %v266_v41  ;;  %v300_v45 = vmul.f32 %v284_v32, %v266_v41  ;;  %v356_v53 = vld [vmem:[#allocation5] sm:$0xff] }
 0x158   : > { %313 = vst.msk [vmem:[#allocation4] sm:$0xff] %vm249_vm2, %v312_v43  ;;  %v357_v58 = vsel %vm249_vm2, %v356_v53, 0.0 }
 0x159   : > { %v308_v46 = vadd.f32 %v307_v44, %v306_v42  ;;  %v301_v47 = vsub.f32 %v300_v45, %v287_v35  ;;  %v358_v63 = vrot.slane %v357_v58, 4 }
 0x15b   : > { %309 = vst.msk [vmem:[#allocation3] sm:$0xff] %vm249_vm2, %v308_v46  ;;  %v302_v49 = vmul.f32 %v527_v30, %v301_v47  ;;  %v359_v6 = vadd.f32 %v358_v63, %v357_v58 }
 0x15d   : > { %v303_v50 = vadd.f32 %v302_v49, %v299_v48  ;;  %v360_v12 = vrot.slane %v359_v6, 2 }
 0x15f   : > { %305 = vst.msk [vmem:[#allocation2] sm:$0xff] %vm249_vm2, %v303_v50  ;;  %v348_v51 = vld [vmem:[#allocation4] sm:$0xff]  ;;  %v361_v20 = vadd.f32 %v360_v12, %v359_v6 }
 0x160   : > { %v349_v52 = vsel %vm249_vm2, %v348_v51, 0.0 }
 0x161   : > { %v350_v54 = vrot.slane %v349_v52, 4  ;;  %v362_v24 = vrot.slane %v361_v20, 1 }
 0x162   : > { %v340_v55 = vld [vmem:[#allocation3] sm:$0xff] }
 0x163   : > { %v341_v56 = vsel %vm249_vm2, %v340_v55, 0.0  ;;  %v351_v57 = vadd.f32 %v350_v54, %v349_v52  ;;  %v363_v25 = vadd.f32 %v362_v24, %v361_v20 }
 0x164   : > { %v342_v59 = vrot.slane %v341_v56, 4 }
 0x165   : > { %v352_v60 = vrot.slane %v351_v57, 2 }
 0x166   : > { %v343_v61 = vadd.f32 %v342_v59, %v341_v56  ;;  %v332_v62 = vld [vmem:[#allocation2] sm:$0xff] }
 0x167   : > { %v333_v0 = vsel %vm249_vm2, %v332_v62, 0.0  ;;  %v353_v2 = vadd.f32 %v352_v60, %v351_v57 }
 0x168   : > { %v344_v1 = vrot.slane %v343_v61, 2  ;;  %v334_v3 = vrot.slane %v333_v0, 4 }
 0x169   : > { %v354_v8 = vrot.slane %v353_v2, 1 }
 0x16a   : > { %v345_v4 = vadd.f32 %v344_v1, %v343_v61  ;;  %v335_v5 = vadd.f32 %v334_v3, %v333_v0 }
 0x16b   : > { %v355_v14 = vadd.f32 %v354_v8, %v353_v2 }
 0x16c   : > { %v346_v7 = vrot.slane %v345_v4, 1  ;;  %v336_v9 = vrot.slane %v335_v5, 2 }
 0x16e   : > { %v347_v10 = vadd.f32 %v346_v7, %v345_v4  ;;  %v337_v11 = vadd.f32 %v336_v9, %v335_v5 }
 0x170   : > { %v366_v15 = vmul.f32 %v365_v13, %v347_v10  ;;  %v338_v17 = vrot.slane %v337_v11, 1 }
 0x172   : > { %v367_v18 = vsub.f32 %v366_v15, %v355_v14  ;;  %v339_v19 = vadd.f32 %v338_v17, %v337_v11 }
 0x174   : > { %v368_v21 = vmul.f32 0.003125, %v367_v18  ;;  %v364_v22 = vmul.f32 0.9, %v339_v19 }
 0x176   : > { %v369_v23 = vadd.f32 %v368_v21, %v364_v22 }
 0x178   : > { %373 = vperm.xlu1 %597, %v369_v23  }
 0x17c   : > { %380 = vperm.xlu1 %597, %v363_v25  }
 0x1f7   : > { %v374_v26 = vpop.permute.xlu1 %373 }
 0x1f8   : > { %v376_v27 = vsel %vm370_vm4, %v374_v26, 0.0 }
 0x1f9   : > { %377 = vst [vmem:[%s226_s22] sm:$0x1] %v376_v27 }
 0x1fa   : > { %615 = shalt.err (!%p612_p5)
}
 0x1fb   : > { %s616_s13 = scalar_lea.hbm %s836_s5, 16  ;;  %s620_s29 = scalar_lea.hbm %s930_s3, 32 }
 0x1fc   : > { %p617_p6 = scmp.ne.s32.totalorder %s836_s5, %s616_s13  ;;  %p621_p10 = scmp.lt.u32.totalorder %s836_s5, %s930_s3 }
 0x1fd   : > { %p622_p11 = scmp.lt.u32.totalorder %s620_s29, %s616_s13  ;;  %p624_p13 = scmp.lt.u32.totalorder %s616_s13, %s836_s5 }
 0x1fe   : > { %p618_p7 = pnand %p617_p6, %p783_p4 }
 0x1ff   : > { %p623_p12 = por %p622_p11, %p621_p10 }
 0x200   : > { %p619_p9 = pneg %p618_p7 }
 0x201   : > { %p625_p0 = por %p624_p13, %p623_p12 }
 0x203   : > { %p626_p1 = pnand %p625_p0, %p619_p9 }
 0x205   : > { %629 = shalt.err (!%p626_p1)
}
 0x206   : > { %534 = dma.vmem_to_hbm [thread:$0]  (%p783_p4), %s838_s24, 16, %s836_s5, %s386_s8   ;;  %v381_v28 = vpop.permute.xlu1 %380 }
 0x207   : > { %s874_s12 = scalar_lea.hbm %s931_s4, %s528_s26  ;;  %v383_v29 = vsel %vm370_vm4, %v381_v28, 0.0  ;;  %s390_s13 = scalar_lea.sflag [#allocation9], %s826_s21 }
 0x208   : > { %384 = vst [vmem:[%s232_s6] sm:$0x1] %v383_v29  ;;  %s630_s14 = scalar_lea.vmem %s877_s7, 16  ;;  %s717_s18 = smov [#allocation8]  }
 0x209   : > { %p631_p2 = scmp.ne.s32.totalorder %s877_s7, %s630_s14  ;;  %s634_s24 = sshll.u32 %s717_s18, 4  ;;  %s635_s24 = int_to_ptr.vmem [resolvable:$false] %s634_s24 }
 0x20a   : > { %s636_s26 = scalar_lea.vmem %s635_s24, 32  ;;  %p637_p6 = scmp.lt.s32.totalorder %s877_s7, %s635_s24 }
 0x20b   : > { %p632_p3 = pnand %p631_p2, %p783_p4  ;;  %p638_p7 = scmp.lt.s32.totalorder %s636_s26, %s630_s14 }
 0x20d   : > { %p633_p5 = pneg %p632_p3  ;;  %p639_p9 = por %p638_p7, %p637_p6 }
 0x20f   : > { %p640_p10 = pnand %p639_p9, %p633_p5 }
 0x211   : > { %643 = shalt.err (!%p640_p10)
}
 0x212   : > { %s644_s21 = scalar_lea.hbm %s874_s12, 16  ;;  %s648_s8 = scalar_lea.hbm %s931_s4, 32 }
 0x213   : > { %p645_p11 = scmp.ne.s32.totalorder %s874_s12, %s644_s21  ;;  %p649_p0 = scmp.lt.u32.totalorder %s874_s12, %s931_s4 }
 0x214   : > { %p650_p1 = scmp.lt.u32.totalorder %s648_s8, %s644_s21  ;;  %p652_p3 = scmp.lt.u32.totalorder %s644_s21, %s874_s12 }
 0x215   : > { %p646_p12 = pnand %p645_p11, %p783_p4 }
 0x216   : > { %p651_p2 = por %p650_p1, %p649_p0 }
 0x217   : > { %p647_p13 = pneg %p646_p12 }
 0x218   : > { %p653_p5 = por %p652_p3, %p651_p2 }
 0x21a   : > { %p654_p6 = pnand %p653_p5, %p647_p13 }
 0x21c   : > { %657 = shalt.err (!%p654_p6)
}
 0x21d   : > { %535 = dma.vmem_to_hbm [thread:$0]  (%p783_p4), %s877_s7, 16, %s874_s12, %s390_s13  }
 0x21e PF: > { %p545_p7 = scmp.ge.s32.totalorder %s712_s20, 2  ;;  %s427_s30 = sand.u32 1, %s692_s15  }
 0x21f   : > { %s428_s10 = scalar_lea.sflag [#allocation7], %s427_s30 }
 0x220   : > { %p539_p9 = pnand %p545_p7, %p790_p8 }
 0x222   : > { %683 = dma.done.wait (!%p539_p9), %s428_s10, 16  }
 0x223   : > { %685 = vsyncadd (!%p539_p9), %s428_s10, 4294967280  ;;  %s436_s9 = scalar_lea.sflag [#allocation9], %s427_s30 }
 0x224   : > { %687 = dma.done.wait (!%p539_p9), %s436_s9, 16  }
 0x225   : > { %689 = vsyncadd (!%p539_p9), %s436_s9, 4294967280  ;;  %s21_s20 = sadd.s32 1, %s712_s20   ;;  %s934_s15 = smov %s696_s16 }
 0x226   : > { %p18_p10 = scmp.ge.s32.totalorder %s21_s20, 4   ;;  %s935_s16 = smov %s700_s17 }
 0x227   : > { %s936_s17 = smov %s796_s28  ;;  %s937_s18 = smov %s708_s19 }
 0x228   : > { %s938_s19 = smov %s940_s23  ;;  %20 = sbr.rel (!%p18_p10) target bundleno = 6 (0x6), region = 95 }
 0x22f   :  { %440 = vsyncpa [#allocation7], 1 }
 0x230   :  { %442 = vsyncpa [#allocation7 + $0x1], 1 }
 0x231   :  { %443 = vsyncpa [#allocation9], 1 }
 0x232   :  { %445 = vsyncpa [#allocation9 + $0x1], 1 }

</bundles_post_ra>
